<compile_context>
chip_gen: v6e
topology: v6e:2x2x1
jax: 0.10.0
libtpu: 0.0.40
codegen_flags: <defaults>
</compile_context>

<pallas_src>
import functools
import math

import jax
import jax.numpy as jnp
from jax.experimental import pallas as pl
from jax.experimental.pallas import tpu as pltpu


def _round_up(a, b):
    return ((a + b - 1) // b) * b


def _cdiv(a, b):
    return (a + b - 1) // b


def _vmem_limit_bytes():
    """Generation-aware VMEM limit: ~75% of physical, capped at 96 MiB.

    v7x (64 MiB physical / TC) -> 48 MiB; v5e / v6e (128 MiB) -> 96 MiB.
    """
    try:
        cap = int(getattr(pltpu.get_tpu_info(), "vmem_capacity_bytes"))
    except Exception:  # no TPU info available -> safe on every generation
        cap = 64 * 1024 * 1024
    return min((cap * 3) // 4, 96 * 1024 * 1024)


# ---------------------------------------------------------------------------
# Standalone LayerNorm kernel (PreNorm's own op; `fn` stays a callable).
# ---------------------------------------------------------------------------
def _layernorm_kernel(x_ref, g_ref, b_ref, o_ref, *, eps):
    xf = x_ref[...].astype(jnp.float32)
    mean = jnp.mean(xf, axis=-1, keepdims=True)
    cen = xf - mean
    var = jnp.mean(cen * cen, axis=-1, keepdims=True)
    xn = cen * jax.lax.rsqrt(var + jnp.float32(eps))
    o_ref[...] = (xn * g_ref[...] + b_ref[...]).astype(o_ref.dtype)


@functools.partial(jax.jit, static_argnames=("block_rows", "eps"))
def layer_norm(x, gamma, beta, *, block_rows=1024, eps=1e-5):
    """LayerNorm over the last dim of x: (..., dim) -> (..., dim)."""
    orig_shape = x.shape
    dim = orig_shape[-1]
    M = math.prod(orig_shape[:-1])
    xf = x.reshape(M, dim)

    itemsize = jnp.dtype(x.dtype).itemsize
    vmem_limit = _vmem_limit_bytes()

    # Big row tiles (memory-bound kernel), but keep >= 2 row tiles so a
    # 2-TC chip (v7x) can shard the "parallel" row axis across both cores,
    # and stay inside the VMEM budget (in+out double-buffered + f32 temps).
    tm = min(block_rows, _round_up(M, 8))
    tm = max(8, min(tm, _round_up(_cdiv(M, 2), 8)))
    per_row = dim * (4 * itemsize + 4)
    max_rows = max(8, (((vmem_limit * 3) // 4) // max(per_row, 1)) // 8 * 8)
    tm = min(tm, max_rows)
    grid_rows = pl.cdiv(M, tm)

    g2 = gamma.reshape(1, dim).astype(jnp.float32)
    b2 = beta.reshape(1, dim).astype(jnp.float32)

    out = pl.pallas_call(
        functools.partial(_layernorm_kernel, eps=eps),
        out_shape=jax.ShapeDtypeStruct((M, dim), x.dtype),
        grid_spec=pltpu.PrefetchScalarGridSpec(
            num_scalar_prefetch=0,
            grid=(grid_rows,),
            in_specs=[
                pl.BlockSpec((tm, dim), lambda i: (i, 0)),
                pl.BlockSpec((1, dim), lambda i: (0, 0)),
                pl.BlockSpec((1, dim), lambda i: (0, 0)),
            ],
            out_specs=pl.BlockSpec((tm, dim), lambda i: (i, 0)),
        ),
        compiler_params=pltpu.CompilerParams(
            dimension_semantics=("parallel",),
            vmem_limit_bytes=vmem_limit),
    )(xf, g2, b2)
    return out.reshape(orig_shape)


def pre_norm(x, gamma, beta, fn, *, eps=1e-5, **kwargs):
    """PreNorm.forward: fn(LayerNorm(x), **kwargs) for an arbitrary fn."""
    return fn(layer_norm(x, gamma, beta, eps=eps), **kwargs)


# ---------------------------------------------------------------------------
# Fused PreNorm(dim, FeedForward): LayerNorm -> Linear -> GELU -> Linear.
# Grid = (row tiles [parallel], hidden chunks [arbitrary, accumulated]).
# ---------------------------------------------------------------------------
def _prenorm_ffn_kernel(x_ref, g_ref, bta_ref, w1_ref, b1_ref, w2_ref, b2_ref,
                        o_ref, xn_ref, acc_ref, *, eps):
    k = pl.program_id(1)

    @pl.when(k == 0)
    def _():
        # LayerNorm of this row tile, computed once and cached in VMEM.
        xf = x_ref[...].astype(jnp.float32)
        mean = jnp.mean(xf, axis=-1, keepdims=True)
        cen = xf - mean
        var = jnp.mean(cen * cen, axis=-1, keepdims=True)
        xn = cen * jax.lax.rsqrt(var + jnp.float32(eps))
        xn = xn * g_ref[...] + bta_ref[...]
        xn_ref[...] = xn.astype(xn_ref.dtype)            # matmul dtype
        # Initialize accumulator with the output bias (added exactly once).
        acc_ref[...] = jnp.broadcast_to(b2_ref[...], acc_ref.shape)

    # Linear(dim -> hidden chunk): operands stay in model dtype (bf16 hits the
    # MXU natively), accumulation in f32.
    h = jnp.dot(xn_ref[...], w1_ref[...], preferred_element_type=jnp.float32)
    h = h + b1_ref[...]
    # Exact (erf-based) GELU in f32 — matches PyTorch nn.GELU default.
    # TODO(synk): on v6e/v7x (bf16 VPU/EUP) this bias+GELU chain could run in
    # bf16 for small dim; kept f32 for exactness and v5e safety.
    h = 0.5 * h * (1.0 + jax.lax.erf(h * jnp.float32(0.7071067811865476)))
    # Linear(hidden chunk -> dim): accumulate partial products.
    acc_ref[...] += jnp.dot(h.astype(w2_ref.dtype), w2_ref[...],
                            preferred_element_type=jnp.float32)

    @pl.when(k == pl.num_programs(1) - 1)
    def _():
        o_ref[...] = acc_ref[...].astype(o_ref.dtype)


def _ffn_tiles(M, dim, hidden, itemsize, block_rows, block_hidden, vmem_limit):
    """Pick (row tile, hidden tile). hidden is already a multiple of 128."""
    # Row tile: multiple of 8; keep >= 2 row tiles so a 2-TC chip (v7x) can
    # shard the "parallel" row axis across both TensorCores.
    tm = min(block_rows, _round_up(M, 8))
    tm = max(8, min(tm, _round_up(_cdiv(M, 2), 8)))

    # VMEM cost independent of the hidden tile (Pallas double-buffers every
    # pipelined input/output block).
    fixed = (2 * tm * dim * itemsize        # x row tile (double buffered)
             + 2 * tm * dim * itemsize      # output row tile (double buffered)
             + tm * dim * itemsize          # cached LN(x) scratch
             + tm * dim * 4                 # f32 accumulator scratch
             + 2 * 3 * dim * 4)             # gamma / beta / b2 rows
    budget = (vmem_limit * 85) // 100 - fixed

    def chunk_bytes(th):
        # W1 chunk + W2 chunk + b1 chunk, double-buffered by the pipeline.
        # TODO(synk): with resident weights pipeline_mode=pl.Buffered(1) would
        # drop the dead second buffer (halving this); kept default for safety.
        return 2 * (2 * dim * th * itemsize + th * 4)

    if chunk_bytes(hidden) <= budget:
        # Whole W1 / W2 VMEM-resident: constant block index across the grid,
        # so the weights are DMA'd from HBM once instead of once per row tile.
        return tm, hidden

    # Stream the hidden dim in equal lane-aligned chunks (th divides hidden
    # exactly, so no extra zero padding / wasted MXU work).
    # TODO(synk): on v5e a pipeline_mode=pl.Buffered(3) on the streamed weight
    # chunks can hide exposed DMA latency; sweep if DMA-bound.
    n128 = hidden // 128
    th = 128
    for n_chunks in range(2, n128 + 1):
        if n128 % n_chunks == 0:
            cand = (n128 // n_chunks) * 128
            if cand <= block_hidden and chunk_bytes(cand) <= budget:
                th = cand
                break
    return tm, th


def prepare_feed_forward_params(w1, b1, w2, b2, compute_dtype=jnp.bfloat16):
    """One-time FFN parameter prep (call once, NOT per step).

    * Zero-pads the hidden dim to a multiple of 128 — exact, since GELU(0)=0
      and zero rows of W2 contribute nothing.
    * Casts W1/W2 to the MXU compute dtype and biases to f32.
    Doing this offline removes a full read+write copy of both weight matrices
    from every forward invocation.
    """
    hidden = w1.shape[1]
    hp = _round_up(hidden, 128)
    if hp != hidden:
        w1 = jnp.pad(w1, ((0, 0), (0, hp - hidden)))
        b1 = jnp.pad(b1, ((0, hp - hidden),))
        w2 = jnp.pad(w2, ((0, hp - hidden), (0, 0)))
    return (w1.astype(compute_dtype), b1.astype(jnp.float32),
            w2.astype(compute_dtype), b2.astype(jnp.float32))


@functools.partial(jax.jit,
                   static_argnames=("block_rows", "block_hidden", "eps"))
def pre_norm_feed_forward(x, gamma, beta, w1, b1, w2, b2, *,
                          block_rows=512, block_hidden=2048, eps=1e-5):
    """Fused PreNorm(dim, FeedForward): GELU(LN(x) @ W1 + b1) @ W2 + b2.

    x: (..., dim).  Weights stored as (in_features, out_features).
    Pass weights through prepare_feed_forward_params() once; the in-jit
    fallback below only triggers for unprepared parameters.
    For peak MXU throughput on v6e/v7x pass x / W1 / W2 in bfloat16; the
    kernel accumulates in f32 either way.
    """
    orig_shape = x.shape
    dim = orig_shape[-1]
    M = math.prod(orig_shape[:-1])
    xf = x.reshape(M, dim)
    compute_dtype = x.dtype

    # Fallback prep (trace-time no-ops when params were prepared offline).
    if w1.dtype != compute_dtype:
        w1 = w1.astype(compute_dtype)
    if w2.dtype != compute_dtype:
        w2 = w2.astype(compute_dtype)
    hidden = w1.shape[1]
    if hidden % 128 != 0:
        hp = _round_up(hidden, 128)
        w1 = jnp.pad(w1, ((0, 0), (0, hp - hidden)))
        b1 = jnp.pad(b1, ((0, hp - hidden),))
        w2 = jnp.pad(w2, ((0, hp - hidden), (0, 0)))
        hidden = hp

    itemsize = jnp.dtype(compute_dtype).itemsize
    vmem_limit = _vmem_limit_bytes()
    tm, th = _ffn_tiles(M, dim, hidden, itemsize,
                        block_rows, block_hidden, vmem_limit)
    grid_rows = pl.cdiv(M, tm)
    grid_hidden = hidden // th

    # Small params pre-cast to f32 (accumulate / LN dtype); O(dim + hidden).
    g2 = gamma.reshape(1, dim).astype(jnp.float32)
    bt2 = beta.reshape(1, dim).astype(jnp.float32)
    b1_2 = b1.reshape(1, hidden).astype(jnp.float32)
    b2_2 = b2.reshape(1, dim).astype(jnp.float32)

    # TODO(synk): for production sizes keep dim a multiple of 128 so output
    # stores are lane-dense unmasked vst (toy dim=32 here uses masked stores).
    out = pl.pallas_call(
        functools.partial(_prenorm_ffn_kernel, eps=eps),
        out_shape=jax.ShapeDtypeStruct((M, dim), x.dtype),
        grid_spec=pltpu.PrefetchScalarGridSpec(
            num_scalar_prefetch=0,
            grid=(grid_rows, grid_hidden),
            in_specs=[
                pl.BlockSpec((tm, dim), lambda i, k: (i, 0)),    # x rows
                pl.BlockSpec((1, dim), lambda i, k: (0, 0)),     # LN gamma
                pl.BlockSpec((1, dim), lambda i, k: (0, 0)),     # LN beta
                pl.BlockSpec((dim, th), lambda i, k: (0, k)),    # W1 chunk
                pl.BlockSpec((1, th), lambda i, k: (0, k)),      # b1 chunk
                pl.BlockSpec((th, dim), lambda i, k: (k, 0)),    # W2 chunk
                pl.BlockSpec((1, dim), lambda i, k: (0, 0)),     # b2
            ],
            out_specs=pl.BlockSpec((tm, dim), lambda i, k: (i, 0)),
            scratch_shapes=[
                pltpu.VMEM((tm, dim), compute_dtype),  # cached LN(x) tile
                pltpu.VMEM((tm, dim), jnp.float32),    # f32 accumulator
            ],
        ),
        compiler_params=pltpu.CompilerParams(
            dimension_semantics=("parallel", "arbitrary"),
            vmem_limit_bytes=vmem_limit),
    )(xf, g2, bt2, w1, b1_2, w2, b2_2)

    return out.reshape(orig_shape)


def init_feed_forward_params(key, dim, hidden_dim, dtype=jnp.float32):
    """nn.Linear-style init; weights stored as (in_features, out_features)."""
    k1, k2, k3, k4 = jax.random.split(key, 4)
    bound1 = 1.0 / math.sqrt(dim)
    bound2 = 1.0 / math.sqrt(hidden_dim)
    w1 = jax.random.uniform(k1, (dim, hidden_dim), dtype, -bound1, bound1)
    b1 = jax.random.uniform(k2, (hidden_dim,), dtype, -bound1, bound1)
    w2 = jax.random.uniform(k3, (hidden_dim, dim), dtype, -bound2, bound2)
    b2 = jax.random.uniform(k4, (dim,), dtype, -bound2, bound2)
    return w1, b1, w2, b2


if __name__ == "__main__":
    key = jax.random.PRNGKey(0)
    B, N, dim, hidden_dim = 2, 8, 32, 64

    kx, kg, kb, kp = jax.random.split(key, 4)
    x = jax.random.normal(kx, (B, N, dim), jnp.float32)
    gamma = 1.0 + 0.1 * jax.random.normal(kg, (dim,), jnp.float32)
    beta = 0.1 * jax.random.normal(kb, (dim,), jnp.float32)
    w1, b1, w2, b2 = init_feed_forward_params(kp, dim, hidden_dim)

    # --- pure-JAX references -------------------------------------------------
    mean = x.mean(-1, keepdims=True)
    var = ((x - mean) ** 2).mean(-1, keepdims=True)
    ln_ref = (x - mean) / jnp.sqrt(var + 1e-5) * gamma + beta
    h_ref = ln_ref @ w1 + b1
    h_ref = 0.5 * h_ref * (1.0 + jax.lax.erf(h_ref / jnp.sqrt(2.0)))
    y_ref = h_ref @ w2 + b2

    # --- fused PreNorm + FeedForward (f32), one-time param prep --------------
    p32 = prepare_feed_forward_params(w1, b1, w2, b2,
                                      compute_dtype=jnp.float32)
    y = pre_norm_feed_forward(x, gamma, beta, *p32)
    jax.block_until_ready(y)
    assert jnp.allclose(y, y_ref, atol=1e-4, rtol=1e-4), "fused f32 mismatch"

    # --- generic PreNorm (LayerNorm kernel + arbitrary fn) -------------------
    ln = pre_norm(x, gamma, beta, fn=lambda z: z)
    jax.block_until_ready(ln)
    assert jnp.allclose(ln, ln_ref, atol=1e-4, rtol=1e-4), "layernorm mismatch"

    # --- bf16 fast path: bf16 MXU operands, f32 accumulation -----------------
    pbf16 = prepare_feed_forward_params(w1, b1, w2, b2,
                                        compute_dtype=jnp.bfloat16)
    yb = pre_norm_feed_forward(x.astype(jnp.bfloat16), gamma, beta, *pbf16)
    jax.block_until_ready(yb)
    assert jnp.allclose(yb.astype(jnp.float32), y_ref, atol=0.1, rtol=0.1), \
        "fused bf16 mismatch"

    print("KERNEL_OK")
</pallas_src>

<mosaic_0001>
module attributes {stable_mosaic.version = 11 : i64} {
  func.func @_prenorm_ffn_kernel(%arg0: i32, %arg1: i32, %arg2: memref<8x32xf32, #tpu.memory_space<vmem>>, %arg3: memref<1x32xf32, #tpu.memory_space<vmem>>, %arg4: memref<1x32xf32, #tpu.memory_space<vmem>>, %arg5: memref<32x128xf32, #tpu.memory_space<vmem>>, %arg6: memref<1x128xf32, #tpu.memory_space<vmem>>, %arg7: memref<128x32xf32, #tpu.memory_space<vmem>>, %arg8: memref<1x32xf32, #tpu.memory_space<vmem>>, %arg9: memref<8x32xf32, #tpu.memory_space<vmem>>, %arg10: memref<8x32xf32, #tpu.memory_space<vmem>>, %arg11: memref<8x32xf32, #tpu.memory_space<vmem>>) attributes {dimension_semantics = [#tpu.dimension_semantics<parallel>, #tpu.dimension_semantics<arbitrary>], iteration_bounds = array<i64: 2, 1>, scalar_prefetch = 0 : i64, scratch_operands = 2 : i64, tpu.core_type = #tpu.core_type<tc>, window_params = [{transform_indices = @transform_0, window_bounds = array<i64: 8, 32>}, {pipeline_mode = #tpu.pipeline_mode<synchronous>, transform_indices = @transform_1, window_bounds = array<i64: 1, 32>}, {pipeline_mode = #tpu.pipeline_mode<synchronous>, transform_indices = @transform_2, window_bounds = array<i64: 1, 32>}, {transform_indices = @transform_3, window_bounds = array<i64: 32, 128>}, {transform_indices = @transform_4, window_bounds = array<i64: 1, 128>}, {transform_indices = @transform_5, window_bounds = array<i64: 128, 32>}, {pipeline_mode = #tpu.pipeline_mode<synchronous>, transform_indices = @transform_6, window_bounds = array<i64: 1, 32>}, {transform_indices = @transform_7, window_bounds = array<i64: 8, 32>}]} {
    %c0_i32 = arith.constant 0 : i32
    %0 = arith.cmpi eq, %arg1, %c0_i32 : i32
    %1 = arith.extui %0 : i1 to i32
    %c0_i32_0 = arith.constant 0 : i32
    %2 = arith.cmpi ne, %1, %c0_i32_0 : i32
    scf.if %2 {
      %c0_18 = arith.constant 0 : index
      %c0_19 = arith.constant 0 : index
      %25 = vector.load %arg2[%c0_18, %c0_19] : memref<8x32xf32, #tpu.memory_space<vmem>>, vector<8x32xf32>
      %cst_20 = arith.constant dense<0.000000e+00> : vector<8xf32>
      %26 = vector.multi_reduction <add>, %25, %cst_20 [1] : vector<8x32xf32> to vector<8xf32>
      %27 = vector.shape_cast %26 : vector<8xf32> to vector<8x1xf32>
      %cst_21 = arith.constant 3.200000e+01 : f32
      %28 = vector.broadcast %cst_21 : f32 to vector<8x1xf32>
      %29 = arith.divf %27, %28 : vector<8x1xf32>
      %30 = vector.broadcast %29 : vector<8x1xf32> to vector<8x32xf32>
      %31 = arith.subf %25, %30 : vector<8x32xf32>
      %32 = arith.mulf %31, %31 : vector<8x32xf32>
      %cst_22 = arith.constant dense<0.000000e+00> : vector<8xf32>
      %33 = vector.multi_reduction <add>, %32, %cst_22 [1] : vector<8x32xf32> to vector<8xf32>
      %34 = vector.shape_cast %33 : vector<8xf32> to vector<8x1xf32>
      %cst_23 = arith.constant 3.200000e+01 : f32
      %35 = vector.broadcast %cst_23 : f32 to vector<8x1xf32>
      %36 = arith.divf %34, %35 : vector<8x1xf32>
      %cst_24 = arith.constant 9.99999974E-6 : f32
      %37 = vector.broadcast %cst_24 : f32 to vector<8x1xf32>
      %38 = arith.addf %36, %37 : vector<8x1xf32>
      %39 = math.rsqrt %38 : vector<8x1xf32>
      %40 = vector.broadcast %39 : vector<8x1xf32> to vector<8x32xf32>
      %41 = arith.mulf %31, %40 : vector<8x32xf32>
      %c0_25 = arith.constant 0 : index
      %c0_26 = arith.constant 0 : index
      %42 = vector.load %arg3[%c0_25, %c0_26] : memref<1x32xf32, #tpu.memory_space<vmem>>, vector<1x32xf32>
      %43 = vector.broadcast %42 : vector<1x32xf32> to vector<8x32xf32>
      %44 = arith.mulf %41, %43 : vector<8x32xf32>
      %c0_27 = arith.constant 0 : index
      %c0_28 = arith.constant 0 : index
      %45 = vector.load %arg4[%c0_27, %c0_28] : memref<1x32xf32, #tpu.memory_space<vmem>>, vector<1x32xf32>
      %46 = vector.broadcast %45 : vector<1x32xf32> to vector<8x32xf32>
      %47 = arith.addf %44, %46 : vector<8x32xf32>
      %c0_29 = arith.constant 0 : index
      %c0_30 = arith.constant 0 : index
      %48 = vector.load %arg10[%c0_29, %c0_30] : memref<8x32xf32, #tpu.memory_space<vmem>>, vector<8x32xf32>
      tpu.vector_store %arg10[%c0_29, %c0_30], %47 {strides = array<i32>} : memref<8x32xf32, #tpu.memory_space<vmem>>, vector<8x32xf32>,
      %c0_31 = arith.constant 0 : index
      %c0_32 = arith.constant 0 : index
      %49 = vector.load %arg8[%c0_31, %c0_32] : memref<1x32xf32, #tpu.memory_space<vmem>>, vector<1x32xf32>
      %50 = vector.shape_cast %49 : vector<1x32xf32> to vector<1x32xf32>
      %51 = vector.broadcast %50 : vector<1x32xf32> to vector<8x32xf32>
      %c0_33 = arith.constant 0 : index
      %c0_34 = arith.constant 0 : index
      %52 = vector.load %arg11[%c0_33, %c0_34] : memref<8x32xf32, #tpu.memory_space<vmem>>, vector<8x32xf32>
      tpu.vector_store %arg11[%c0_33, %c0_34], %51 {strides = array<i32>} : memref<8x32xf32, #tpu.memory_space<vmem>>, vector<8x32xf32>,
    } else {
    }
    %c0 = arith.constant 0 : index
    %c0_1 = arith.constant 0 : index
    %3 = vector.load %arg10[%c0, %c0_1] : memref<8x32xf32, #tpu.memory_space<vmem>>, vector<8x32xf32>
    %c0_2 = arith.constant 0 : index
    %c0_3 = arith.constant 0 : index
    %4 = vector.load %arg5[%c0_2, %c0_3] : memref<32x128xf32, #tpu.memory_space<vmem>>, vector<32x128xf32>
    %cst = arith.constant dense<0.000000e+00> : vector<8x128xf32>
    %5 = tpu.matmul %3, %4, %cst {dimension_numbers = #tpu.dot_dimension_numbers<[1], [0], [0], [1], [0, 0, 1, 1], [], []>} : vector<8x32xf32>, vector<32x128xf32>, vector<8x128xf32> -> vector<8x128xf32>
    %c0_4 = arith.constant 0 : index
    %c0_5 = arith.constant 0 : index
    %6 = vector.load %arg6[%c0_4, %c0_5] : memref<1x128xf32, #tpu.memory_space<vmem>>, vector<1x128xf32>
    %7 = vector.broadcast %6 : vector<1x128xf32> to vector<8x128xf32>
    %8 = arith.addf %5, %7 : vector<8x128xf32>
    %cst_6 = arith.constant 5.000000e-01 : f32
    %9 = vector.broadcast %cst_6 : f32 to vector<8x128xf32>
    %10 = arith.mulf %9, %8 : vector<8x128xf32>
    %cst_7 = arith.constant 0.707106769 : f32
    %11 = vector.broadcast %cst_7 : f32 to vector<8x128xf32>
    %12 = arith.mulf %8, %11 : vector<8x128xf32>
    %13 = math.erf %12 : vector<8x128xf32>
    %cst_8 = arith.constant 1.000000e+00 : f32
    %14 = vector.broadcast %cst_8 : f32 to vector<8x128xf32>
    %15 = arith.addf %14, %13 : vector<8x128xf32>
    %16 = arith.mulf %10, %15 : vector<8x128xf32>
    %c0_9 = arith.constant 0 : index
    %c0_10 = arith.constant 0 : index
    %17 = vector.load %arg11[%c0_9, %c0_10] : memref<8x32xf32, #tpu.memory_space<vmem>>, vector<8x32xf32>
    %c0_11 = arith.constant 0 : index
    %c0_12 = arith.constant 0 : index
    %18 = vector.load %arg7[%c0_11, %c0_12] : memref<128x32xf32, #tpu.memory_space<vmem>>, vector<128x32xf32>
    %cst_13 = arith.constant dense<0.000000e+00> : vector<8x32xf32>
    %19 = tpu.matmul %16, %18, %cst_13 {dimension_numbers = #tpu.dot_dimension_numbers<[1], [0], [0], [1], [0, 0, 1, 1], [], []>} : vector<8x128xf32>, vector<128x32xf32>, vector<8x32xf32> -> vector<8x32xf32>
    %20 = arith.addf %17, %19 : vector<8x32xf32>
    %c0_14 = arith.constant 0 : index
    %c0_15 = arith.constant 0 : index
    %21 = vector.load %arg11[%c0_14, %c0_15] : memref<8x32xf32, #tpu.memory_space<vmem>>, vector<8x32xf32>
    tpu.vector_store %arg11[%c0_14, %c0_15], %20 {strides = array<i32>} : memref<8x32xf32, #tpu.memory_space<vmem>>, vector<8x32xf32>,
    %c0_i32_16 = arith.constant 0 : i32
    %22 = arith.cmpi eq, %arg1, %c0_i32_16 : i32
    %23 = arith.extui %22 : i1 to i32
    %c0_i32_17 = arith.constant 0 : i32
    %24 = arith.cmpi ne, %23, %c0_i32_17 : i32
    scf.if %24 {
      %c0_18 = arith.constant 0 : index
      %c0_19 = arith.constant 0 : index
      %25 = vector.load %arg11[%c0_18, %c0_19] : memref<8x32xf32, #tpu.memory_space<vmem>>, vector<8x32xf32>
      %c0_20 = arith.constant 0 : index
      %c0_21 = arith.constant 0 : index
      %26 = vector.load %arg9[%c0_20, %c0_21] : memref<8x32xf32, #tpu.memory_space<vmem>>, vector<8x32xf32>
      tpu.vector_store %arg9[%c0_20, %c0_21], %25 {strides = array<i32>} : memref<8x32xf32, #tpu.memory_space<vmem>>, vector<8x32xf32>,
    } else {
    }
    return
  }
  func.func @transform_0(%arg0: i32, %arg1: i32) -> (i32, i32) {
    %c0_i32 = arith.constant 0 : i32
    %c0_i32_0 = arith.constant 0 : i32
    return %arg0, %c0_i32 : i32, i32
  }
  func.func @transform_1(%arg0: i32, %arg1: i32) -> (i32, i32) {
    %c0_i32 = arith.constant 0 : i32
    %c0_i32_0 = arith.constant 0 : i32
    %c0_i32_1 = arith.constant 0 : i32
    return %c0_i32, %c0_i32_0 : i32, i32
  }
  func.func @transform_2(%arg0: i32, %arg1: i32) -> (i32, i32) {
    %c0_i32 = arith.constant 0 : i32
    %c0_i32_0 = arith.constant 0 : i32
    %c0_i32_1 = arith.constant 0 : i32
    return %c0_i32, %c0_i32_0 : i32, i32
  }
  func.func @transform_3(%arg0: i32, %arg1: i32) -> (i32, i32) {
    %c0_i32 = arith.constant 0 : i32
    %c0_i32_0 = arith.constant 0 : i32
    return %c0_i32, %arg1 : i32, i32
  }
  func.func @transform_4(%arg0: i32, %arg1: i32) -> (i32, i32) {
    %c0_i32 = arith.constant 0 : i32
    %c0_i32_0 = arith.constant 0 : i32
    return %c0_i32, %arg1 : i32, i32
  }
  func.func @transform_5(%arg0: i32, %arg1: i32) -> (i32, i32) {
    %c0_i32 = arith.constant 0 : i32
    %c0_i32_0 = arith.constant 0 : i32
    return %arg1, %c0_i32 : i32, i32
  }
  func.func @transform_6(%arg0: i32, %arg1: i32) -> (i32, i32) {
    %c0_i32 = arith.constant 0 : i32
    %c0_i32_0 = arith.constant 0 : i32
    %c0_i32_1 = arith.constant 0 : i32
    return %c0_i32, %c0_i32_0 : i32, i32
  }
  func.func @transform_7(%arg0: i32, %arg1: i32) -> (i32, i32) {
    %c0_i32 = arith.constant 0 : i32
    %c0_i32_0 = arith.constant 0 : i32
    return %arg0, %c0_i32 : i32, i32
  }
}

</mosaic_0001>

<bundles_post_ra>
// kernel: pre_norm_feed_forward.1
= control target key start
LH: loop header
LB: loop body
LE: loop exit
PB: predicated region body
PF: predicated region fallthrough
CT: control target
= control target key end

     0   :  { %12 = vsyncpa [#allocation5], 0  ;;  %s1167_s0 = inlined_call_operand.vmem [shape: f32[16,32], index: 0, kind: input, shape index: {}]   ;;  %s1168_s1 = inlined_call_operand.vmem [shape: f32[1,32], index: 1, kind: input, shape index: {}]   ;;  %s1169_s2 = inlined_call_operand.vmem [shape: f32[1,32], index: 2, kind: input, shape index: {}]   ;;  %s1170_s3 = inlined_call_operand.vmem [shape: f32[32,128], index: 3, kind: input, shape index: {}]   ;;  %s1171_s4 = inlined_call_operand.vmem [shape: f32[1,128], index: 4, kind: input, shape index: {}]   ;;  %s1172_s5 = inlined_call_operand.vmem [shape: f32[128,32], index: 5, kind: input, shape index: {}]   ;;  %s1173_s6 = inlined_call_operand.vmem [shape: f32[1,32], index: 6, kind: input, shape index: {}]   ;;  %s1174_s7 = inlined_call_operand.hbm [shape: f32[16,32], index: 7, kind: output, shape index: {}]  }
   0x1   :  { %14 = vsyncpa [#allocation5 + $0x1], 0  ;;  %s961_s24 = smov 0   ;;  %s963_s25 = smov 0  }
   0x2   :  { %s965_s26 = smov 0   ;;  %s967_s27 = smov 0  }
   0x3   :  { %s969_s28 = smov 0   ;;  %s971_s29 = smov 0  }
   0x4 LB: > { %s692_s30 = sadd.s32 4294967295, %s916_s29   ;;  %s693_s8 = sadd.s32 4294967294, %s916_s29   ;;  %s916_s29 = sphi %s971_s29, %s20_s29   ;;  %s912_s28 = sphi %s969_s28, %s1181_s28   ;;  %s908_s27 = sphi %s967_s27, %s1180_s27   ;;  %s904_s26 = sphi %s965_s26, %s1179_s26   ;;  %s900_s25 = sphi %s963_s25, %s1178_s25   ;;  %s896_s24 = sphi %s961_s24, %s1177_s24  }
   0x5   : > { %s32_s9 = sadd.s32 1, %s912_s28  ;;  %s206_s10 = sadd.s32 1, %s904_s26 }
   0x6   : > { %p34_p0 = scmp.ge.s32.totalorder %s32_s9, 2  ;;  %p216_p1 = scmp.ne.s32.totalorder %s904_s26, %s900_s25 }
   0x7   : > { %p217_p2 = scmp.eq.s32.totalorder %s692_s30, 1  ;;  %p222_p3 = scmp.ne.s32.totalorder %s900_s25, %s896_s24 }
   0x8   : > { %s1183_s9 = smov (%p34_p0, %s32_s9), 0  ;;  %p223_p5 = scmp.eq.s32.totalorder %s693_s8, 1 }
   0x9   : > { %p1001_p4 = por %p217_p2, %p216_p1  ;;  %s203_s12 = ssub.s32 %s912_s28, %s1183_s9 }
   0xa   : > { %p699_p6 = scmp.ge.s32.totalorder %s916_s29, 1  ;;  %p204_p7 = scmp.eq.s32.totalorder %s203_s12, 0 }
   0xb   : > { %p1008_p8 = por %p223_p5, %p222_p3  ;;  %p279_p9 = scmp.lt.s32.totalorder %s916_s29, 3 }
   0xc   : > { %s1014_s14 = scalar_select %p204_p7, %s904_s26, %s206_s10  }
   0xd   : > { %p280_p10 = pnand %p699_p6, %p279_p9 }
   0xe   : > { %p322_p11 = scmp.lt.s32.totalorder (!%p280_p10), %s908_s27, 1  ;;  %s708_s18 = sshll.u32 (!%p280_p10), %s908_s27, 7 }
   0xf   : > { %283 = sbr.rel (%p280_p10) target bundleno = 772 (0x304), region = 48  ;;  %s1126_s23 = scalar_lea.hbm (!%p280_p10), %s1174_s7, %s708_s18 }
  0x10   : > { %s920_s10 = smov (!%p280_p10), [#allocation4]  }
  0x11   : > { %s844_s12 = sshll.u32 (!%p280_p10), %s920_s10, 4  ;;  %s845_s12 = int_to_ptr.vmem [resolvable:$false] %s844_s12 }
  0x14   : > { %s323_s15 = scalar_select %p322_p11, %s908_s27, 1  ;;  %vm344_vm0 = vcmask 261120   ;;  %v918_v7 = vmov 0.0   ;;  %v388_v8 = vld [vmem:[%s1170_s3 + $0x18] sm:$0xff]  ;;  %v387_v9 = vld [vmem:[%s1170_s3 + $0x10] sm:$0xff]  ;;  %vm919_vm1 = vmmov 0  }
  0x15   : > { %733 = vmatprep.subr.mxu0 %v918_v7  ;;  %744 = vmatprep.subr.mxu1 %v918_v7  ;;  %v386_v10 = vld [vmem:[%s1170_s3 + $0x8] sm:$0xff]  ;;  %v385_v11 = vld [vmem:[%s1170_s3] sm:$0xff]  ;;  %v491_v12 = vld [vmem:[%s1172_s5 + $0x78] sm:$0xff]  ;;  %s846_s27 = scalar_lea.vmem %s845_s12, 256 }
  0x16   : > { %s701_s16 = sshll.u32 %s323_s15, 3  ;;  %734 = vmatpush3.msra.mxu0 %v388_v8  ;;  %741 = vmatprep.mubr.msk.f32.mxu0 %vm919_vm1, %v918_v7  ;;  %v490_v13 = vld [vmem:[%s1172_s5 + $0x70] sm:$0xff]  ;;  %v489_v14 = vld [vmem:[%s1172_s5 + $0x68] sm:$0xff]  ;;  %v488_v15 = vld [vmem:[%s1172_s5 + $0x60] sm:$0xff] }
  0x17   : > { %s325_s19 = scalar_lea.vmem %s1167_s0, %s701_s16  ;;  %735 = vmatprep.subr.mxu0 %v918_v7  ;;  %776 = vmatprep.mubr.msk.f32.mxu1 %vm919_vm1, %v918_v7  ;;  %v702_v20 = vld [vmem:[%s1168_s1] ss:$0 sm:$0xff]  ;;  %v487_v26 = vld [vmem:[%s1172_s5 + $0x58] sm:$0xff]  ;;  %v486_v27 = vld [vmem:[%s1172_s5 + $0x50] sm:$0xff]  ;;  %s319_s16 = sand.u32 1, %s900_s25  }
  0x18   : > { %v343_v0 = vld [vmem:[%s325_s19] sm:$0xff]  ;;  %736 = vmatpush3.msra.mxu0 %v387_v9  ;;  %745 = vmatpush3.msra.mxu1 %v491_v12  ;;  %v485_v28 = vld [vmem:[%s1172_s5 + $0x48] sm:$0xff]  ;;  %v483_v30 = vld [vmem:[%s1172_s5 + $0x38] sm:$0xff]  ;;  %s700_s17 = sshll.u32 %s319_s16, 3  ;;  %s570_s30 = scalar_lea.sflag [#allocation5], %s319_s16 }
  0x19   : > { %v345_v1 = vsel %vm344_vm0, %v343_v0, 0.0  ;;  %737 = vmatprep.subr.mxu0 %v918_v7  ;;  %746 = vmatprep.subr.mxu1 %v918_v7  ;;  %v703_v22 = vld [vmem:[%s1169_s2] ss:$0 sm:$0xff]  ;;  %v482_v31 = vld [vmem:[%s1172_s5 + $0x30] sm:$0xff]  ;;  %v481_v32 = vld [vmem:[%s1172_s5 + $0x28] sm:$0xff]  ;;  %s321_s19 = scalar_lea.vmem [#allocation4], %s700_s17 }
  0x1a   : > { %346 = vadd.xlane.f32.xlu0 %v345_v1  ;;  %738 = vmatpush3.msra.mxu0 %v386_v10  ;;  %v484_v29 = vld [vmem:[%s1172_s5 + $0x40] sm:$0xff]  ;;  %v479_v34 = vld [vmem:[%s1172_s5 + $0x18] sm:$0xff]  ;;  %v478_v35 = vld [vmem:[%s1172_s5 + $0x10] sm:$0xff]  ;;  %s583_s20 = sshll.u32 %s321_s19, 4  ;;  %s584_s20 = int_to_ptr.vmem [resolvable:$true] %s583_s20 }
  0x1b   : > { %739 = vmatprep.subr.mxu0 %v918_v7  ;;  %747 = vmatpush3.msra.mxu1 %v490_v13  ;;  %v480_v33 = vld [vmem:[%s1172_s5 + $0x20] sm:$0xff]  ;;  %v477_v36 = vld [vmem:[%s1172_s5 + $0x8] sm:$0xff]  ;;  %s840_s8 = scalar_lea.vmem %s584_s20, 128  ;;  %p847_p1 = scmp.lt.s32.totalorder %s584_s20, %s845_s12 }
  0x1c   : > { %740 = vmatpush3.msra.mxu0 %v385_v11  ;;  %748 = vmatprep.subr.mxu1 %v918_v7  ;;  %v476_v37 = vld [vmem:[%s1172_s5] sm:$0xff]  ;;  %p841_p12 = scmp.ne.s32.totalorder %s584_s20, %s840_s8  ;;  %p848_p2 = scmp.lt.s32.totalorder %s846_s27, %s840_s8 }
  0x1d   : > { %749 = vmatpush3.msra.mxu1 %v489_v14  ;;  %v704_v38 = vld [vmem:[%s1173_s6] ss:$0 sm:$0xff] }
  0x1e   : > { %750 = vmatprep.subr.mxu1 %v918_v7  ;;  %383 = vst.msk [vmem:[#allocation3] sm:$0xff] %vm344_vm0, %v704_v38  ;;  %v705_v39 = vld [vmem:[%s1171_s4] ss:$0 sm:$0xff]  ;;  %p842_p13 = pnand %p841_p12, %p1001_p4  ;;  %p849_p3 = por %p848_p2, %p847_p1 }
  0x1f   : > { %751 = vmatpush3.msra.mxu1 %v488_v15 }
  0x20   : > { %752 = vmatprep.subr.mxu1 %v918_v7  ;;  %p843_p0 = pneg %p842_p13 }
  0x21   : > { %753 = vmatpush3.msra.mxu1 %v487_v26 }
  0x22   : > { %754 = vmatprep.subr.mxu1 %v918_v7  ;;  %p850_p5 = pnand %p849_p3, %p843_p0 }
  0x23   : > { %755 = vmatpush3.msra.mxu1 %v486_v27 }
  0x24   : > { %756 = vmatprep.subr.mxu1 %v918_v7 }
  0x25   : > { %757 = vmatpush3.msra.mxu1 %v485_v28  ;;  %v475_v48 = vld [vmem:[#allocation3] sm:$0xff] }
  0x26   : > { %758 = vmatprep.subr.mxu1 %v918_v7 }
  0x27   : > { %759 = vmatpush3.msra.mxu1 %v484_v29 }
  0x28   : > { %760 = vmatprep.subr.mxu1 %v918_v7 }
  0x29   : > { %761 = vmatpush3.msra.mxu1 %v483_v30 }
  0x2a   : > { %762 = vmatprep.subr.mxu1 %v918_v7 }
  0x2b   : > { %763 = vmatpush3.msra.mxu1 %v482_v31 }
  0x2c   : > { %764 = vmatprep.subr.mxu1 %v918_v7 }
  0x2d   : > { %765 = vmatpush3.msra.mxu1 %v481_v32 }
  0x2e   : > { %766 = vmatprep.subr.mxu1 %v918_v7 }
  0x2f   : > { %767 = vmatpush3.msra.mxu1 %v480_v33 }
  0x30   : > { %768 = vmatprep.subr.mxu1 %v918_v7 }
  0x31   : > { %769 = vmatpush3.msra.mxu1 %v479_v34 }
  0x32   : > { %770 = vmatprep.subr.mxu1 %v918_v7 }
  0x33   : > { %771 = vmatpush3.msra.mxu1 %v478_v35 }
  0x34   : > { %772 = vmatprep.subr.mxu1 %v918_v7 }
  0x35   : > { %773 = vmatpush3.msra.mxu1 %v477_v36 }
  0x36   : > { %774 = vmatprep.subr.mxu1 %v918_v7 }
  0x37   : > { %775 = vmatpush3.msra.mxu1 %v476_v37 }
  0xa3   : > { %v347_v2 = vpop.xlane.xlu0 %346 }
  0xa4   : > { %v349_v3 = vmul.f32 0.03125, %v347_v2 }
  0xa6   : > { %v350_v4 = vsub.f32 %v343_v0, %v349_v3 }
  0xa8   : > { %v351_v5 = vmul.f32 %v350_v4, %v350_v4 }
  0xaa   : > { %v352_v6 = vsel %vm344_vm0, %v351_v5, 0.0 }
  0xab   : > { %353 = vadd.xlane.f32.xlu0 %v352_v6 }
 0x134   : > { %v354_v16 = vpop.xlane.xlu0 %353 }
 0x135   : > { %v355_v17 = vmul.f32 0.03125, %v354_v16 }
 0x137   : > { %v356_v18 = vadd.f32 1e-05, %v355_v17 }
 0x139   : > { %836 = vrsqrt.f32 %v356_v18 }
 0x146   : > { %v837_v19 = vpop.eup %836 }
 0x147   : > { %v358_v21 = vmul.f32 %v837_v19, %v350_v4 }
 0x149   : > { %v366_v23 = vmul.f32 %v702_v20, %v358_v21 }
 0x14b   : > { %v374_v24 = vadd.f32 %v703_v22, %v366_v23 }
 0x14d   : > { %375 = vst.msk [vmem:[#allocation2] sm:$0xff] %vm344_vm0, %v374_v24 }
 0x154   : > { %v384_v25 = vld [vmem:[#allocation2] sm:$0xff] }
 0x155   : > { %742 = vmatmul.mubr.msk.f32.vlgmr.msra.gmra.mxu0 %vm344_vm0, %v384_v25 }
 0x215   : > { %v466_v40 = vpop.f32.mrf.mxu0 }
 0x216   : > { %v467_v41 = vadd.f32 %v705_v39, %v466_v40 }
 0x217   : > { %v743_v42 = vpop.f32.mrf.mxu0 }
 0x218   : > { %v471_v43 = vmul.f32 0.70710677, %v467_v41  ;;  %v470_v45 = vmul.f32 0.5, %v467_v41 }
 0x21a   : > { %838 = verf.f32 %v471_v43 }
 0x227   : > { %v839_v44 = vpop.eup %838 }
 0x228   : > { %v473_v46 = vadd.f32 1.0, %v839_v44 }
 0x22a   : > { %v474_v47 = vmul.f32 %v473_v46, %v470_v45 }
 0x22c   : > { %777 = vmatmul.mubr.f32.vlgmr.msra.gmra.mxu1 %v474_v47 }
 0x2ec   : > { %v558_v49 = vpop.f32.mrf.mxu1 }
 0x2ed   : > { %v562_v50 = vadd.f32 %v558_v49, %v475_v48 }
 0x2ee   : > { %v778_v51 = vpop.f32.mrf.mxu1 }
 0x2ef   : > { %563 = vst.msk [vmem:[#allocation3] sm:$0xff] %vm344_vm0, %v562_v50 }
 0x2f6   : > { %v567_v52 = vld [vmem:[#allocation3] sm:$0xff] }
 0x2f7   : > { %568 = vst.msk [vmem:[%s321_s19] sm:$0xff] %vm344_vm0, %v567_v52 }
 0x2f8   : > { %853 = shalt.err (!%p850_p5)
}
 0x2f9   : > { %s854_s15 = scalar_lea.hbm %s1126_s23, 128  ;;  %s858_s18 = scalar_lea.hbm %s1174_s7, 256 }
 0x2fa   : > { %p855_p6 = scmp.ne.s32.totalorder %s1126_s23, %s854_s15  ;;  %p859_p10 = scmp.lt.s32.totalorder %s1126_s23, %s1174_s7 }
 0x2fb   : > { %p860_p11 = scmp.lt.s32.totalorder %s858_s18, %s854_s15 }
 0x2fc   : > { %p856_p7 = pnand %p855_p6, %p1001_p4 }
 0x2fd   : > { %p861_p12 = por %p860_p11, %p859_p10 }
 0x2fe   : > { %p857_p9 = pneg %p856_p7 }
 0x300   : > { %p862_p13 = pnand %p861_p12, %p857_p9 }
 0x302   : > { %865 = shalt.err (!%p862_p13)
}
 0x303   : > { %779 = dma.vmem_to_hbm [thread:$0]  (%p1001_p4), %s584_s20, 128, %s1126_s23, %s570_s30  }
 0x304 PF: > { %p785_p0 = scmp.ge.s32.totalorder %s916_s29, 2  ;;  %s595_s22 = sand.u32 1, %s896_s24  }
 0x305   : > { %s596_s8 = scalar_lea.sflag [#allocation5], %s595_s22 }
 0x306   : > { %p782_p1 = pnand %p785_p0, %p1008_p8 }
 0x308   : > { %p783_p2 = pneg %p782_p1 }
 0x30a   : > { %891 = dma.done.wait (%p783_p2), %s596_s8, 128  }
 0x30b   : > { %893 = vsyncadd (%p783_p2), %s596_s8, 4294967168  ;;  %s20_s29 = sadd.s32 1, %s916_s29   ;;  %s1177_s24 = smov %s900_s25 }
 0x30c   : > { %p17_p3 = scmp.ge.s32.totalorder %s20_s29, 4   ;;  %s1178_s25 = smov %s904_s26 }
 0x30d   : > { %s1179_s26 = smov %s1014_s14  ;;  %s1180_s27 = smov %s912_s28 }
 0x30e   : > { %s1181_s28 = smov %s1183_s9  ;;  %19 = sbr.rel (!%p17_p3) target bundleno = 4 (0x4), region = 100 }
 0x313   :  { %601 = vsyncpa [#allocation5], 1 }
 0x314   :  { %603 = vsyncpa [#allocation5 + $0x1], 1 }

</bundles_post_ra>
